<compile_context>
chip_gen: v6e
topology: v6e:2x2x1
jax: 0.10.0
libtpu: 0.0.40
codegen_flags: <defaults>
</compile_context>

<pallas_src>
import functools

import jax
import jax.numpy as jnp
from jax import lax
from jax.experimental import pallas as pl
from jax.experimental.pallas import tpu as pltpu

D_MODEL = 512          # input_embedding_dimensions
VOCAB_SIZE = 40000     # vocab_size
MAX_SEQ_LEN = 1194     # max_sequence_length


def _round_up(x, m):
    return ((x + m - 1) // m) * m


def _pick_seq_tile(S, max_tile):
    """Largest multiple-of-8 tile <= max_tile, preferring one that exactly
    divides the 8-rounded sequence length (zero wasted tail gathers)."""
    s8 = _round_up(S, 8)
    cap = min(max_tile, s8)
    cap -= cap % 8
    cap = max(cap, 8)
    for cand in range(cap, 7, -8):
        if s8 % cand == 0:
            if cand >= min(128, cap):
                return cand
            break
    return cap


def _pos_embed_kernel(ids_ref, pos_ref, tok_hbm_ref, out_ref,
                      tok_vmem, sem, *, seq_tile, unroll):
    # ids_ref:     (B, S_ceil) int32 token ids in SMEM (scalar prefetch)
    # pos_ref:     (T, D) positional rows for this sequence chunk (VMEM)
    # tok_hbm_ref: (VOCAB, D) token embedding table, left in HBM (pl.ANY)
    # out_ref:     (1, T, D) output tile for (batch b, chunk j)
    # tok_vmem:    (T, D) VMEM scratch for the gathered token rows
    # sem:         scalar DMA semaphore shared by all T row copies
    j = pl.program_id(0)          # sequence-chunk index
    b = pl.program_id(1)          # batch index
    base = j * seq_tile

    # 1) Issue all T row-gather DMAs (partially unrolled so id loads, address
    #    math and descriptor pushes co-issue); every copy signals `sem`.
    def _issue(t, carry):
        row = ids_ref[b, base + t]
        pltpu.make_async_copy(
            tok_hbm_ref.at[pl.ds(row, 1)],
            tok_vmem.at[pl.ds(t, 1)],
            sem,
        ).start()
        return carry

    lax.fori_loop(0, seq_tile, _issue, 0, unroll=unroll)

    # 2) Single group wait: this descriptor covers the whole (T, D) tile, so
    #    its byte count equals the sum of the T started (1, D) row copies.
    pltpu.make_async_copy(
        tok_hbm_ref.at[pl.ds(0, seq_tile)],
        tok_vmem,
        sem,
    ).wait()

    # 3) One dense (T, D) add and one dense, lane-aligned (1, T, D) store.
    out_ref[0] = tok_vmem[...] + pos_ref[...]


def positional_embeddings(ids, tok_table, pos_table, *, seq_tile=512):
    """ids: (B, S) int token ids -> (B, S, D) float32 embeddings."""
    B, S = ids.shape
    _, D = tok_table.shape
    assert S <= pos_table.shape[0], "sequence longer than max_sequence_length"

    T = _pick_seq_tile(S, seq_tile)
    n_chunks = pl.cdiv(S, T)
    s_ceil = n_chunks * T

    # Token ids, zero-padded along the sequence axis so any padded tail
    # positions gather (valid) vocab row 0; kept 2-D to avoid the 1-D SMEM
    # next-pow2 padding blow-up at production B*S.
    ids_pad = jnp.zeros((B, s_ceil), jnp.int32).at[:, :S].set(ids.astype(jnp.int32))

    kernel = functools.partial(_pos_embed_kernel, seq_tile=T, unroll=min(8, T))

    grid_spec = pltpu.PrefetchScalarGridSpec(
        num_scalar_prefetch=1,            # token ids -> SMEM
        grid=(n_chunks, B),               # B innermost so the pos tile is reused
        in_specs=[
            # positional rows: dense (T, D) tile keyed only on chunk index j
            pl.BlockSpec((T, D), lambda j, b, ids: (j, 0)),
            # token table stays in HBM; gathered manually row-by-row
            pl.BlockSpec(memory_space=pl.ANY),
        ],
        # Exact (B, S, D) output: the last chunk may be a partial block whose
        # out-of-range rows are clipped on writeback -> no post-kernel slice.
        out_specs=pl.BlockSpec((1, T, D), lambda j, b, ids: (b, j, 0)),
        scratch_shapes=[
            pltpu.VMEM((T, D), tok_table.dtype),
            pltpu.SemaphoreType.DMA(()),
        ],
    )

    return pl.pallas_call(
        kernel,
        out_shape=jax.ShapeDtypeStruct((B, S, D), tok_table.dtype),
        grid_spec=grid_spec,
        compiler_params=pltpu.CompilerParams(
            dimension_semantics=("parallel", "parallel")),
    )(ids_pad, pos_table, tok_table)


if __name__ == "__main__":
    key = jax.random.PRNGKey(0)
    k_tok, k_pos, k_ids, k_ids2 = jax.random.split(key, 4)

    # Deterministic synthetic parameters (nn.Embedding default init is N(0, 1)).
    tok_table = jax.random.normal(k_tok, (VOCAB_SIZE, D_MODEL), jnp.float32)
    pos_table = jax.random.normal(k_pos, (MAX_SEQ_LEN, D_MODEL), jnp.float32)

    # Small demo input matching the module's forward: batch=2, seq=8 token ids.
    B, S = 2, 8
    ids = jax.random.randint(k_ids, (B, S), 0, VOCAB_SIZE, dtype=jnp.int32)

    out = positional_embeddings(ids, tok_table, pos_table)
    out = jax.block_until_ready(out)

    ref = tok_table[ids] + pos_table[:S][None, :, :]
    assert out.shape == (B, S, D_MODEL)
    assert jnp.allclose(out, ref, atol=1e-6, rtol=1e-6)

    # Multi-chunk / partial-tail check (forced small tile): S=37 with T=16 ->
    # 3 chunks, last chunk partial, padded tail ids exercised.
    B2, S2 = 2, 37
    ids2 = jax.random.randint(k_ids2, (B2, S2), 0, VOCAB_SIZE, dtype=jnp.int32)
    out2 = jax.block_until_ready(
        positional_embeddings(ids2, tok_table, pos_table, seq_tile=16))
    ref2 = tok_table[ids2] + pos_table[:S2][None, :, :]
    assert out2.shape == (B2, S2, D_MODEL)
    assert jnp.allclose(out2, ref2, atol=1e-6, rtol=1e-6)

    print("KERNEL_OK")
</pallas_src>

<mosaic_0001>
module attributes {stable_mosaic.version = 11 : i64} {
  func.func @_pos_embed_kernel(%arg0: i32, %arg1: i32, %arg2: memref<2x8xi32, #tpu.memory_space<smem>>, %arg3: memref<8x512xf32, #tpu.memory_space<vmem>>, %arg4: memref<40000x512xf32, #tpu.memory_space<any>>, %arg5: memref<1x8x512xf32, #tpu.memory_space<vmem>>, %arg6: memref<8x512xf32, #tpu.memory_space<vmem>>, %arg7: memref<!tpu.dma_semaphore, #tpu.memory_space<semaphore_mem>>) attributes {dimension_semantics = [#tpu.dimension_semantics<parallel>, #tpu.dimension_semantics<parallel>], iteration_bounds = array<i64: 1, 2>, scalar_prefetch = 1 : i64, scratch_operands = 2 : i64, tpu.core_type = #tpu.core_type<tc>, window_params = [{transform_indices = @transform_0, window_bounds = array<i64: 8, 512>}, {}, {transform_indices = @transform_2, window_bounds = array<i64: 1, 8, 512>}]} {
    %c8_i32 = arith.constant 8 : i32
    %0 = arith.muli %arg0, %c8_i32 : i32
    %c0_i32 = arith.constant 0 : i32
    %1 = arith.addi %0, %c0_i32 : i32
    %2 = arith.index_cast %arg1 : i32 to index
    %3 = arith.index_cast %1 : i32 to index
    %4 = memref.load %arg2[%2, %3] : memref<2x8xi32, #tpu.memory_space<smem>>
    %c0_i32_0 = arith.constant 0 : i32
    %5 = tpu.memref_slice %arg4[%4, %c0_i32_0] : memref<40000x512xf32, #tpu.memory_space<any>> -> memref<1x512xf32, #tpu.memory_space<any>>
    %c0_i32_1 = arith.constant 0 : i32
    %6 = tpu.memref_slice %arg6[%c0_i32, %c0_i32_1] : memref<8x512xf32, #tpu.memory_space<vmem>> -> memref<1x512xf32, #tpu.memory_space<vmem>>
    tpu.enqueue_dma source(%5 : memref<1x512xf32, #tpu.memory_space<any>>) target(%6 : memref<1x512xf32, #tpu.memory_space<vmem>>) target_semaphore(%arg7 : memref<!tpu.dma_semaphore, #tpu.memory_space<semaphore_mem>>)
    %c1_i32 = arith.constant 1 : i32
    %7 = arith.addi %0, %c1_i32 : i32
    %8 = arith.index_cast %arg1 : i32 to index
    %9 = arith.index_cast %7 : i32 to index
    %10 = memref.load %arg2[%8, %9] : memref<2x8xi32, #tpu.memory_space<smem>>
    %c0_i32_2 = arith.constant 0 : i32
    %11 = tpu.memref_slice %arg4[%10, %c0_i32_2] : memref<40000x512xf32, #tpu.memory_space<any>> -> memref<1x512xf32, #tpu.memory_space<any>>
    %c0_i32_3 = arith.constant 0 : i32
    %12 = tpu.memref_slice %arg6[%c1_i32, %c0_i32_3] : memref<8x512xf32, #tpu.memory_space<vmem>> -> memref<1x512xf32, #tpu.memory_space<vmem>>
    tpu.enqueue_dma source(%11 : memref<1x512xf32, #tpu.memory_space<any>>) target(%12 : memref<1x512xf32, #tpu.memory_space<vmem>>) target_semaphore(%arg7 : memref<!tpu.dma_semaphore, #tpu.memory_space<semaphore_mem>>)
    %c2_i32 = arith.constant 2 : i32
    %13 = arith.addi %0, %c2_i32 : i32
    %14 = arith.index_cast %arg1 : i32 to index
    %15 = arith.index_cast %13 : i32 to index
    %16 = memref.load %arg2[%14, %15] : memref<2x8xi32, #tpu.memory_space<smem>>
    %c0_i32_4 = arith.constant 0 : i32
    %17 = tpu.memref_slice %arg4[%16, %c0_i32_4] : memref<40000x512xf32, #tpu.memory_space<any>> -> memref<1x512xf32, #tpu.memory_space<any>>
    %c0_i32_5 = arith.constant 0 : i32
    %18 = tpu.memref_slice %arg6[%c2_i32, %c0_i32_5] : memref<8x512xf32, #tpu.memory_space<vmem>> -> memref<1x512xf32, #tpu.memory_space<vmem>>
    tpu.enqueue_dma source(%17 : memref<1x512xf32, #tpu.memory_space<any>>) target(%18 : memref<1x512xf32, #tpu.memory_space<vmem>>) target_semaphore(%arg7 : memref<!tpu.dma_semaphore, #tpu.memory_space<semaphore_mem>>)
    %c3_i32 = arith.constant 3 : i32
    %19 = arith.addi %0, %c3_i32 : i32
    %20 = arith.index_cast %arg1 : i32 to index
    %21 = arith.index_cast %19 : i32 to index
    %22 = memref.load %arg2[%20, %21] : memref<2x8xi32, #tpu.memory_space<smem>>
    %c0_i32_6 = arith.constant 0 : i32
    %23 = tpu.memref_slice %arg4[%22, %c0_i32_6] : memref<40000x512xf32, #tpu.memory_space<any>> -> memref<1x512xf32, #tpu.memory_space<any>>
    %c0_i32_7 = arith.constant 0 : i32
    %24 = tpu.memref_slice %arg6[%c3_i32, %c0_i32_7] : memref<8x512xf32, #tpu.memory_space<vmem>> -> memref<1x512xf32, #tpu.memory_space<vmem>>
    tpu.enqueue_dma source(%23 : memref<1x512xf32, #tpu.memory_space<any>>) target(%24 : memref<1x512xf32, #tpu.memory_space<vmem>>) target_semaphore(%arg7 : memref<!tpu.dma_semaphore, #tpu.memory_space<semaphore_mem>>)
    %c4_i32 = arith.constant 4 : i32
    %25 = arith.addi %0, %c4_i32 : i32
    %26 = arith.index_cast %arg1 : i32 to index
    %27 = arith.index_cast %25 : i32 to index
    %28 = memref.load %arg2[%26, %27] : memref<2x8xi32, #tpu.memory_space<smem>>
    %c0_i32_8 = arith.constant 0 : i32
    %29 = tpu.memref_slice %arg4[%28, %c0_i32_8] : memref<40000x512xf32, #tpu.memory_space<any>> -> memref<1x512xf32, #tpu.memory_space<any>>
    %c0_i32_9 = arith.constant 0 : i32
    %30 = tpu.memref_slice %arg6[%c4_i32, %c0_i32_9] : memref<8x512xf32, #tpu.memory_space<vmem>> -> memref<1x512xf32, #tpu.memory_space<vmem>>
    tpu.enqueue_dma source(%29 : memref<1x512xf32, #tpu.memory_space<any>>) target(%30 : memref<1x512xf32, #tpu.memory_space<vmem>>) target_semaphore(%arg7 : memref<!tpu.dma_semaphore, #tpu.memory_space<semaphore_mem>>)
    %c5_i32 = arith.constant 5 : i32
    %31 = arith.addi %0, %c5_i32 : i32
    %32 = arith.index_cast %arg1 : i32 to index
    %33 = arith.index_cast %31 : i32 to index
    %34 = memref.load %arg2[%32, %33] : memref<2x8xi32, #tpu.memory_space<smem>>
    %c0_i32_10 = arith.constant 0 : i32
    %35 = tpu.memref_slice %arg4[%34, %c0_i32_10] : memref<40000x512xf32, #tpu.memory_space<any>> -> memref<1x512xf32, #tpu.memory_space<any>>
    %c0_i32_11 = arith.constant 0 : i32
    %36 = tpu.memref_slice %arg6[%c5_i32, %c0_i32_11] : memref<8x512xf32, #tpu.memory_space<vmem>> -> memref<1x512xf32, #tpu.memory_space<vmem>>
    tpu.enqueue_dma source(%35 : memref<1x512xf32, #tpu.memory_space<any>>) target(%36 : memref<1x512xf32, #tpu.memory_space<vmem>>) target_semaphore(%arg7 : memref<!tpu.dma_semaphore, #tpu.memory_space<semaphore_mem>>)
    %c6_i32 = arith.constant 6 : i32
    %37 = arith.addi %0, %c6_i32 : i32
    %38 = arith.index_cast %arg1 : i32 to index
    %39 = arith.index_cast %37 : i32 to index
    %40 = memref.load %arg2[%38, %39] : memref<2x8xi32, #tpu.memory_space<smem>>
    %c0_i32_12 = arith.constant 0 : i32
    %41 = tpu.memref_slice %arg4[%40, %c0_i32_12] : memref<40000x512xf32, #tpu.memory_space<any>> -> memref<1x512xf32, #tpu.memory_space<any>>
    %c0_i32_13 = arith.constant 0 : i32
    %42 = tpu.memref_slice %arg6[%c6_i32, %c0_i32_13] : memref<8x512xf32, #tpu.memory_space<vmem>> -> memref<1x512xf32, #tpu.memory_space<vmem>>
    tpu.enqueue_dma source(%41 : memref<1x512xf32, #tpu.memory_space<any>>) target(%42 : memref<1x512xf32, #tpu.memory_space<vmem>>) target_semaphore(%arg7 : memref<!tpu.dma_semaphore, #tpu.memory_space<semaphore_mem>>)
    %c7_i32 = arith.constant 7 : i32
    %43 = arith.addi %0, %c7_i32 : i32
    %44 = arith.index_cast %arg1 : i32 to index
    %45 = arith.index_cast %43 : i32 to index
    %46 = memref.load %arg2[%44, %45] : memref<2x8xi32, #tpu.memory_space<smem>>
    %c0_i32_14 = arith.constant 0 : i32
    %47 = tpu.memref_slice %arg4[%46, %c0_i32_14] : memref<40000x512xf32, #tpu.memory_space<any>> -> memref<1x512xf32, #tpu.memory_space<any>>
    %c0_i32_15 = arith.constant 0 : i32
    %48 = tpu.memref_slice %arg6[%c7_i32, %c0_i32_15] : memref<8x512xf32, #tpu.memory_space<vmem>> -> memref<1x512xf32, #tpu.memory_space<vmem>>
    tpu.enqueue_dma source(%47 : memref<1x512xf32, #tpu.memory_space<any>>) target(%48 : memref<1x512xf32, #tpu.memory_space<vmem>>) target_semaphore(%arg7 : memref<!tpu.dma_semaphore, #tpu.memory_space<semaphore_mem>>)
    %c8_i32_16 = arith.constant 8 : i32
    %c0_i32_17 = arith.constant 0 : i32
    %c0_i32_18 = arith.constant 0 : i32
    %49 = tpu.memref_slice %arg4[%c0_i32_17, %c0_i32_18] : memref<40000x512xf32, #tpu.memory_space<any>> -> memref<8x512xf32, #tpu.memory_space<any>>
    tpu.wait_dma2 semaphore(%arg7 : memref<!tpu.dma_semaphore, #tpu.memory_space<semaphore_mem>>) src(%49 : memref<8x512xf32, #tpu.memory_space<any>>) dst(%arg6 : memref<8x512xf32, #tpu.memory_space<vmem>>)
    %c0 = arith.constant 0 : index
    %c0_19 = arith.constant 0 : index
    %50 = vector.load %arg6[%c0, %c0_19] : memref<8x512xf32, #tpu.memory_space<vmem>>, vector<8x512xf32>
    %c0_20 = arith.constant 0 : index
    %c0_21 = arith.constant 0 : index
    %51 = vector.load %arg3[%c0_20, %c0_21] : memref<8x512xf32, #tpu.memory_space<vmem>>, vector<8x512xf32>
    %52 = arith.addf %50, %51 : vector<8x512xf32>
    %c0_22 = arith.constant 0 : index
    %c0_23 = arith.constant 0 : index
    %c0_24 = arith.constant 0 : index
    %53 = vector.load %arg5[%c0_22, %c0_23, %c0_24] : memref<1x8x512xf32, #tpu.memory_space<vmem>>, vector<1x8x512xf32>
    %54 = vector.shape_cast %53 : vector<1x8x512xf32> to vector<8x512xf32>
    %55 = vector.shape_cast %52 : vector<8x512xf32> to vector<1x8x512xf32>
    tpu.vector_store %arg5[%c0_22, %c0_23, %c0_24], %55 {strides = array<i32>} : memref<1x8x512xf32, #tpu.memory_space<vmem>>, vector<1x8x512xf32>,
    return
  }
  func.func @transform_0(%arg0: i32, %arg1: i32, %arg2: memref<2x8xi32, #tpu.memory_space<smem>>) -> (i32, i32) {
    %c0_i32 = arith.constant 0 : i32
    %c0_i32_0 = arith.constant 0 : i32
    return %arg0, %c0_i32 : i32, i32
  }
  func.func @transform_2(%arg0: i32, %arg1: i32, %arg2: memref<2x8xi32, #tpu.memory_space<smem>>) -> (i32, i32, i32) {
    %c0_i32 = arith.constant 0 : i32
    %c0_i32_0 = arith.constant 0 : i32
    return %arg1, %arg0, %c0_i32 : i32, i32, i32
  }
}

</mosaic_0001>

<bundles_post_ra>
// kernel: tpu_custom_call.1
= control target key start
LH: loop header
LB: loop body
LE: loop exit
PB: predicated region body
PF: predicated region fallthrough
CT: control target
= control target key end

     0   :  { %s861_s12 = smov [#allocation5]   ;;  %s1206_s0 = inlined_call_operand.hbm [shape: s32[2,8], index: 0, kind: input, shape index: {}]   ;;  %s1207_s1 = inlined_call_operand.hbm [shape: f32[1194,512], index: 1, kind: input, shape index: {}]   ;;  %s1208_s2 = inlined_call_operand.hbm [shape: f32[40000,512], index: 2, kind: input, shape index: {}]   ;;  %s1209_s3 = inlined_call_operand.hbm [shape: f32[2,8,512], index: 3, kind: output, shape index: {}]  }
   0x1   :  { %1218 = sst [smem:[#allocation29_spill]] %s1207_s1 }
   0x2   :  { %9 = dma.hbm_to_smem %s1206_s0, 32, %s861_s12, [#allocation4] }
   0x3   :  { %825 = dma.done.wait [#allocation4], 32 }
   0x4   :  { %826 = vsyncadd [#allocation4], 4294967264 }
   0x5   :  { %11 = sfence }
   0x6   :  { %12 = vsyncpa [#allocation7], 0 }
   0x7   :  { %13 = vsyncpa [#allocation8], 0 }
   0x8   :  { %15 = vsyncpa [#allocation8 + $0x1], 0  ;;  %s897_s15 = smov 0   ;;  %s899_s16 = smov 0  }
   0x9   :  { %s901_s17 = smov 0   ;;  %s903_s18 = smov 0  }
   0xa   :  { %s905_s19 = smov 0   ;;  %s907_s20 = smov 0  }
   0xb LB: > { %1219 = sst [smem:[#allocation22_spill]] %s839_s15  ;;  %s450_s0 = sadd.s32 4294967295, %s859_s20   ;;  %s859_s20 = sphi %s907_s20, %s21_s20   ;;  %s855_s19 = sphi %s905_s19, %s1238_s19   ;;  %s851_s18 = sphi %s903_s18, %s1237_s18   ;;  %s847_s17 = sphi %s901_s17, %s1236_s17   ;;  %s843_s16 = sphi %s899_s16, %s1240_s16   ;;  %s839_s15 = sphi %s897_s15, %s1239_s15  }
   0xc   : > { %1220 = sst [smem:[#allocation23_spill]] %s847_s17  ;;  %s451_s21 = sadd.s32 4294967294, %s859_s20  }
   0xd   : > { %1221 = sst [smem:[#allocation24_spill]] %s855_s19  ;;  %s30_s22 = sadd.s32 1, %s855_s19 }
   0xe   : > { %1222 = sst [smem:[#allocation25_spill]] %s859_s20  ;;  %s68_s23 = sadd.s32 1, %s847_s17 }
   0xf   : > { %p31_p0 = scmp.ge.s32.totalorder %s30_s22, 2  ;;  %p78_p1 = scmp.ne.s32.totalorder %s847_s17, %s843_s16 }
  0x10   : > { %p79_p2 = scmp.eq.s32.totalorder %s450_s0, 1  ;;  %p84_p3 = scmp.ne.s32.totalorder %s843_s16, %s839_s15 }
  0x11   : > { %s1242_s22 = smov (%p31_p0, %s30_s22), 0  ;;  %p85_p5 = scmp.eq.s32.totalorder %s451_s21, 1 }
  0x12   : > { %1223 = sst [smem:[#allocation26_spill]] %s1242_s22  ;;  %p937_p4 = por %p79_p2, %p78_p1 }
  0x13   : > { %s63_s25 = ssub.s32 %s855_s19, %s1242_s22  ;;  %p452_p6 = scmp.ge.s32.totalorder %s859_s20, 1 }
  0x14   : > { %p66_p7 = scmp.eq.s32.totalorder %s63_s25, 0  ;;  %p944_p8 = por %p85_p5, %p84_p3 }
  0x15   : > { %p92_p9 = scmp.lt.s32.totalorder %s859_s20, 3  ;;  %p956_p11 = scmp.eq.s32.totalorder %s450_s0, 0 }
  0x16   : > { %s1225_s26 = scalar_select %p944_p8, 1, 0 }
  0x17   : > { %s950_s27 = scalar_select %p66_p7, %s847_s17, %s68_s23  }
  0x18   : > { %1226 = sst [smem:[#allocation27_spill]] %s1225_s26  ;;  %p952_p10 = pnand %p452_p6, %p92_p9 }
  0x19   : > { %1227 = sst [smem:[#allocation28_spill]] %s950_s27  ;;  %s862_s30 = smov [#allocation6]  }
  0x1a   : > { %p494_p12 = pneg %p952_p10  ;;  %s108_s4 = sshll.u32 %s862_s30, 4  ;;  %s109_s4 = int_to_ptr.vmem [resolvable:$true] %s108_s4 }
  0x1b   : > { %s584_s5 = scalar_lea.vmem %s109_s4, 512  ;;  %p592_p5 = scmp.lt.s32.totalorder %s109_s4, %s109_s4 }
  0x1c   : > { %p495_p13 = pnand %p956_p11, %p494_p12  ;;  %p585_p1 = scmp.ne.s32.totalorder %s109_s4, %s584_s5 }
  0x1d   : > { %p593_p6 = scmp.lt.s32.totalorder %s584_s5, %s584_s5 }
  0x1e   : > { %p575_p0 = pneg %p495_p13 }
  0x1f   : > { %p594_p7 = por %p593_p6, %p592_p5 }
  0x20   : > { %p587_p2 = pnand %p585_p1, %p575_p0 }
  0x22   : > { %p588_p3 = pneg %p587_p2 }
  0x24   : > { %p595_p9 = pnand %p594_p7, %p588_p3 }
  0x26   : > { %598 = shalt.err (!%p595_p9)
}
  0x27   : > { %s1230_s1 = sld [smem:[#allocation29_spill]] }
  0x29   : > { %121 = sbr.rel (%p952_p10) target bundleno = 259 (0x103), region = 24 }
  0x2d   : > { %497 = dma.hbm_to_vmem [thread:$0]  (!%p495_p13), %s1230_s1, 512, %s109_s4, [#allocation7]  }
  0x2e   : > { %828 = dma.done.wait (%p956_p11), [#allocation7], 512  }
  0x2f   : > { %830 = vsyncadd (%p956_p11), [#allocation7], 4294966784  ;;  %s1210_s8 = sand.u32 1, %s843_s16   ;;  %s975_s9 = sshll.u32 %s851_s18, 7 }
  0x30   : > { %s979_s10 = sshll.u32 %s1210_s8, 5  ;;  %s144_s11 = sld [smem:[#allocation5 + %s975_s9]] }
  0x31   : > { %s863_s12 = smov [#allocation2]   ;;  %s163_s14 = sadd.s32 1, %s975_s9 }
  0x32   : > { %s152_s13 = sshll.u32 %s863_s12, 4  ;;  %s985_s0 = sld [smem:[#allocation5 + %s163_s14]]  ;;  %s982_s13 = int_to_ptr.vmem [resolvable:$true] %s152_s13 }
  0x33   : > { %s864_s21 = smov [#allocation2 + $0x1]   ;;  %s184_s4 = sadd.s32 2, %s975_s9 }
  0x34   : > { %s173_s23 = sshll.u32 %s864_s21, 4  ;;  %s990_s6 = sld [smem:[#allocation5 + %s184_s4]]  ;;  %s987_s23 = int_to_ptr.vmem [resolvable:$true] %s173_s23 }
  0x35   : > { %s998_s21 = scalar_lea.hbm %s1208_s2, 2560000 }
  0x36   : > { %s145_s25 = sshrl.u32 %s144_s11, 3  ;;  %s146_s28 = sand.u32 7, %s144_s11  }
  0x37   : > { %s458_s29 = sshll.u32 %s145_s25, 5 }
  0x38   : > { %s148_s30 = sadd.s32 %s458_s29, %s146_s28 }
  0x39   : > { %s459_s5 = sshll.u32 %s148_s30, 4 }
  0x3a   : > { %s150_s12 = scalar_lea.hbm %s1208_s2, %s459_s5 }
  0x3b   : > { %s599_s1 = scalar_lea.hbm %s150_s12, 64  ;;  %p602_p11 = scmp.lt.s32.totalorder %s150_s12, %s1208_s2 }
  0x3c   : > { %p600_p10 = scmp.ne.s32.totalorder %s150_s12, %s599_s1  ;;  %p603_p12 = scmp.lt.s32.totalorder %s998_s21, %s599_s1 }
  0x3e   : > { %p604_p13 = por %p603_p12, %p602_p11 }
  0x40   : > { %p605_p0 = pnand %p604_p13, %p600_p10 }
  0x42   : > { %608 = shalt.err (!%p605_p0)  }
  0x43   : > { %s609_s8 = scalar_lea.vmem %s982_s13, 64  ;;  %s1007_s28 = scalar_lea.vmem %s982_s13, 512 }
  0x44   : > { %p610_p1 = scmp.ne.s32.totalorder %s982_s13, %s609_s8  ;;  %p614_p2 = scmp.lt.s32.totalorder %s982_s13, %s982_s13 }
  0x45   : > { %p615_p3 = scmp.lt.s32.totalorder %s1007_s28, %s609_s8 }
  0x47   : > { %p616_p5 = por %p615_p3, %p614_p2 }
  0x49   : > { %p617_p6 = pnand %p616_p5, %p610_p1 }
  0x4b   : > { %620 = shalt.err (!%p617_p6)  }
  0x4c   : > { %s865_s22 = smov 128   ;;  %s866_s1 = smov 1  }
  0x4d   : > { %155 = dma.hbm_to_vmem [thread:$0]  %s150_s12, 64, %s982_s13, [#allocation3], %s865_s22, %s865_s22, %s866_s1 }
  0x4e   : > { %s165_s29 = sshrl.u32 %s985_s0, 3  ;;  %s166_s30 = sand.u32 7, %s985_s0  }
  0x4f   : > { %s461_s4 = sshll.u32 %s165_s29, 5  ;;  %s867_s5 = smov [#allocation2 + $0x2]  }
  0x50   : > { %s194_s7 = sshll.u32 %s867_s5, 4  ;;  %s168_s14 = sadd.s32 %s461_s4, %s166_s30  ;;  %s1018_s7 = int_to_ptr.vmem [resolvable:$true] %s194_s7 }
  0x51   : > { %s462_s11 = sshll.u32 %s168_s14, 4  ;;  %s186_s25 = sshrl.u32 %s990_s6, 3 }
  0x52   : > { %s170_s27 = scalar_lea.hbm %s1208_s2, %s462_s11  ;;  %s187_s17 = sand.u32 7, %s990_s6  }
  0x53   : > { %s621_s26 = scalar_lea.hbm %s170_s27, 64  ;;  %p624_p9 = scmp.lt.s32.totalorder %s170_s27, %s1208_s2 }
  0x54   : > { %p622_p7 = scmp.ne.s32.totalorder %s170_s27, %s621_s26  ;;  %p625_p10 = scmp.lt.s32.totalorder %s998_s21, %s621_s26 }
  0x56   : > { %p626_p11 = por %p625_p10, %p624_p9 }
  0x58   : > { %p627_p12 = pnand %p626_p11, %p622_p7 }
  0x5a   : > { %630 = shalt.err (!%p627_p12)  }
  0x5b   : > { %s631_s0 = scalar_lea.vmem %s987_s23, 64  ;;  %p636_p0 = scmp.lt.s32.totalorder %s987_s23, %s982_s13 }
  0x5c   : > { %p632_p13 = scmp.ne.s32.totalorder %s987_s23, %s631_s0  ;;  %p637_p1 = scmp.lt.s32.totalorder %s1007_s28, %s631_s0 }
  0x5e   : > { %p638_p2 = por %p637_p1, %p636_p0 }
  0x60   : > { %p639_p3 = pnand %p638_p2, %p632_p13 }
  0x62   : > { %642 = shalt.err (!%p639_p3)  }
  0x63   : > { %176 = dma.hbm_to_vmem [thread:$0]  %s170_s27, 64, %s987_s23, [#allocation3], %s865_s22, %s865_s22, %s866_s1 }
  0x64   : > { %s464_s15 = sshll.u32 %s186_s25, 5  ;;  %s205_s19 = sadd.s32 3, %s975_s9 }
  0x65   : > { %s189_s20 = sadd.s32 %s464_s15, %s187_s17  ;;  %s1039_s26 = sld [smem:[#allocation5 + %s205_s19]] }
  0x66   : > { %s465_s6 = sshll.u32 %s189_s20, 4  ;;  %s868_s4 = smov [#allocation2 + $0x3]  }
  0x67   : > { %s191_s30 = scalar_lea.hbm %s1208_s2, %s465_s6  ;;  %s215_s5 = sshll.u32 %s868_s4, 4  ;;  %s1057_s5 = int_to_ptr.vmem [resolvable:$true] %s215_s5 }
  0x68   : > { %s643_s14 = scalar_lea.hbm %s191_s30, 64  ;;  %p646_p6 = scmp.lt.s32.totalorder %s191_s30, %s1208_s2 }
  0x69   : > { %p644_p5 = scmp.ne.s32.totalorder %s191_s30, %s643_s14  ;;  %p647_p7 = scmp.lt.s32.totalorder %s998_s21, %s643_s14 }
  0x6b   : > { %p648_p9 = por %p647_p7, %p646_p6 }
  0x6d   : > { %p649_p10 = pnand %p648_p9, %p644_p5 }
  0x6f   : > { %652 = shalt.err (!%p649_p10)  }
  0x70   : > { %s653_s17 = scalar_lea.vmem %s1018_s7, 64  ;;  %p658_p12 = scmp.lt.s32.totalorder %s1018_s7, %s982_s13 }
  0x71   : > { %p654_p11 = scmp.ne.s32.totalorder %s1018_s7, %s653_s17  ;;  %p659_p13 = scmp.lt.s32.totalorder %s1007_s28, %s653_s17 }
  0x73   : > { %p660_p0 = por %p659_p13, %p658_p12 }
  0x75   : > { %p661_p1 = pnand %p660_p0, %p654_p11 }
  0x77   : > { %664 = shalt.err (!%p661_p1)  }
  0x78   : > { %197 = dma.hbm_to_vmem [thread:$0]  %s191_s30, 64, %s1018_s7, [#allocation3], %s865_s22, %s865_s22, %s866_s1 }
  0x79   : > { %s226_s27 = sadd.s32 4, %s975_s9  ;;  %s207_s25 = sshrl.u32 %s1039_s26, 3 }
  0x7a   : > { %s1060_s23 = sld [smem:[#allocation5 + %s226_s27]]  ;;  %s208_s0 = sand.u32 7, %s1039_s26  }
  0x7b   : > { %s467_s15 = sshll.u32 %s207_s25, 5  ;;  %s869_s19 = smov [#allocation2 + $0x4]  }
  0x7c   : > { %s236_s20 = sshll.u32 %s869_s19, 4  ;;  %s210_s6 = sadd.s32 %s467_s15, %s208_s0  ;;  %s1064_s20 = int_to_ptr.vmem [resolvable:$true] %s236_s20 }
  0x7d   : > { %s468_s12 = sshll.u32 %s210_s6, 4  ;;  %s247_s29 = sadd.s32 5, %s975_s9 }
  0x7e   : > { %s212_s7 = scalar_lea.hbm %s1208_s2, %s468_s12  ;;  %s1070_s30 = sld [smem:[#allocation5 + %s247_s29]] }
  0x7f   : > { %s665_s11 = scalar_lea.hbm %s212_s7, 64  ;;  %p668_p3 = scmp.lt.s32.totalorder %s212_s7, %s1208_s2 }
  0x80   : > { %p666_p2 = scmp.ne.s32.totalorder %s212_s7, %s665_s11  ;;  %p669_p5 = scmp.lt.s32.totalorder %s998_s21, %s665_s11 }
  0x82   : > { %p670_p6 = por %p669_p5, %p668_p3 }
  0x84   : > { %p671_p7 = pnand %p670_p6, %p666_p2 }
  0x86   : > { %674 = shalt.err (!%p671_p7)  }
  0x87   : > { %s675_s26 = scalar_lea.vmem %s1057_s5, 64  ;;  %p680_p10 = scmp.lt.s32.totalorder %s1057_s5, %s982_s13 }
  0x88   : > { %p676_p9 = scmp.ne.s32.totalorder %s1057_s5, %s675_s26  ;;  %p681_p11 = scmp.lt.s32.totalorder %s1007_s28, %s675_s26 }
  0x8a   : > { %p682_p12 = por %p681_p11, %p680_p10 }
  0x8c   : > { %p683_p13 = pnand %p682_p12, %p676_p9 }
  0x8e   : > { %686 = shalt.err (!%p683_p13)  }
  0x8f   : > { %218 = dma.hbm_to_vmem [thread:$0]  %s212_s7, 64, %s1057_s5, [#allocation3], %s865_s22, %s865_s22, %s866_s1 }
  0x90   : > { %s228_s27 = sshrl.u32 %s1060_s23, 3  ;;  %s229_s25 = sand.u32 7, %s1060_s23  }
  0x91   : > { %s470_s0 = sshll.u32 %s228_s27, 5  ;;  %s870_s19 = smov [#allocation2 + $0x5]  }
  0x92   : > { %s231_s15 = sadd.s32 %s470_s0, %s229_s25  ;;  %s257_s6 = sshll.u32 %s870_s19, 4  ;;  %s1087_s6 = int_to_ptr.vmem [resolvable:$true] %s257_s6 }
  0x93   : > { %s471_s12 = sshll.u32 %s231_s15, 4  ;;  %s249_s11 = sshrl.u32 %s1070_s30, 3 }
  0x94   : > { %s233_s14 = scalar_lea.hbm %s1208_s2, %s471_s12 }
  0x95   : > { %s687_s8 = scalar_lea.hbm %s233_s14, 64  ;;  %p690_p1 = scmp.lt.s32.totalorder %s233_s14, %s1208_s2 }
  0x96   : > { %p688_p0 = scmp.ne.s32.totalorder %s233_s14, %s687_s8  ;;  %p691_p2 = scmp.lt.s32.totalorder %s998_s21, %s687_s8 }
  0x98   : > { %p692_p3 = por %p691_p2, %p690_p1 }
  0x9a   : > { %p693_p5 = pnand %p692_p3, %p688_p0 }
  0x9c   : > { %696 = shalt.err (!%p693_p5)  }
  0x9d   : > { %s697_s5 = scalar_lea.vmem %s1064_s20, 64  ;;  %p702_p7 = scmp.lt.s32.totalorder %s1064_s20, %s982_s13 }
  0x9e   : > { %p698_p6 = scmp.ne.s32.totalorder %s1064_s20, %s697_s5  ;;  %p703_p9 = scmp.lt.s32.totalorder %s1007_s28, %s697_s5 }
  0xa0   : > { %p704_p10 = por %p703_p9, %p702_p7 }
  0xa2   : > { %p705_p11 = pnand %p704_p10, %p698_p6 }
  0xa4   : > { %708 = shalt.err (!%p705_p11)  }
  0xa5   : > { %239 = dma.hbm_to_vmem [thread:$0]  %s233_s14, 64, %s1064_s20, [#allocation3], %s865_s22, %s865_s22, %s866_s1 }
  0xa6   : > { %s250_s23 = sand.u32 7, %s1070_s30   ;;  %s473_s7 = sshll.u32 %s249_s11, 5 }
  0xa7   : > { %s252_s27 = sadd.s32 %s473_s7, %s250_s23  ;;  %s268_s25 = sadd.s32 6, %s975_s9 }
  0xa8   : > { %s474_s0 = sshll.u32 %s252_s27, 4  ;;  %s269_s15 = sld [smem:[#allocation5 + %s268_s25]] }
  0xa9   : > { %s254_s29 = scalar_lea.hbm %s1208_s2, %s474_s0 }
  0xaa   : > { %s709_s4 = scalar_lea.hbm %s254_s29, 64  ;;  %p712_p13 = scmp.lt.s32.totalorder %s254_s29, %s1208_s2 }
  0xab   : > { %p710_p12 = scmp.ne.s32.totalorder %s254_s29, %s709_s4  ;;  %p713_p0 = scmp.lt.s32.totalorder %s998_s21, %s709_s4 }
  0xad   : > { %p714_p1 = por %p713_p0, %p712_p13 }
  0xaf   : > { %p715_p2 = pnand %p714_p1, %p710_p12 }
  0xb1   : > { %718 = shalt.err (!%p715_p2)  }
  0xb2   : > { %s719_s20 = scalar_lea.vmem %s1087_s6, 64  ;;  %p724_p5 = scmp.lt.s32.totalorder %s1087_s6, %s982_s13 }
  0xb3   : > { %p720_p3 = scmp.ne.s32.totalorder %s1087_s6, %s719_s20  ;;  %p725_p6 = scmp.lt.s32.totalorder %s1007_s28, %s719_s20 }
  0xb5   : > { %p726_p7 = por %p725_p6, %p724_p5 }
  0xb7   : > { %p727_p9 = pnand %p726_p7, %p720_p3 }
  0xb9   : > { %730 = shalt.err (!%p727_p9)  }
  0xba   : > { %260 = dma.hbm_to_vmem [thread:$0]  %s254_s29, 64, %s1087_s6, [#allocation3], %s865_s22, %s865_s22, %s866_s1 }
  0xbb   : > { %s289_s30 = sadd.s32 7, %s975_s9  ;;  %s871_s11 = smov [#allocation2 + $0x6]  }
  0xbc   : > { %s1125_s14 = sld [smem:[#allocation5 + %s289_s30]]  ;;  %s278_s26 = sshll.u32 %s871_s11, 4  ;;  %s279_s26 = int_to_ptr.vmem [resolvable:$true] %s278_s26 }
  0xbd   : > { %s270_s5 = sshrl.u32 %s269_s15, 3  ;;  %s271_s23 = sand.u32 7, %s269_s15  }
  0xbe   : > { %s476_s7 = sshll.u32 %s270_s5, 5  ;;  %s872_s0 = smov [#allocation2 + $0x7]  }
  0xbf   : > { %s273_s27 = sadd.s32 %s476_s7, %s271_s23  ;;  %s299_s19 = sshll.u32 %s872_s0, 4  ;;  %s300_s19 = int_to_ptr.vmem [resolvable:$true] %s299_s19 }
  0xc0   : > { %s477_s25 = sshll.u32 %s273_s27, 4 }
  0xc1   : > { %s275_s8 = scalar_lea.hbm %s1208_s2, %s477_s25 }
  0xc2   : > { %s291_s6 = sshrl.u32 %s1125_s14, 3  ;;  %s731_s9 = scalar_lea.hbm %s275_s8, 64 }
  0xc3   : > { %p732_p10 = scmp.ne.s32.totalorder %s275_s8, %s731_s9  ;;  %p734_p11 = scmp.lt.s32.totalorder %s275_s8, %s1208_s2 }
  0xc4   : > { %p735_p12 = scmp.lt.s32.totalorder %s998_s21, %s731_s9 }
  0xc6   : > { %p736_p13 = por %p735_p12, %p734_p11 }
  0xc8   : > { %p737_p0 = pnand %p736_p13, %p732_p10 }
  0xca   : > { %740 = shalt.err (!%p737_p0)  }
  0xcb   : > { %s741_s15 = scalar_lea.vmem %s279_s26, 64  ;;  %p746_p2 = scmp.lt.s32.totalorder %s279_s26, %s982_s13 }
  0xcc   : > { %p742_p1 = scmp.ne.s32.totalorder %s279_s26, %s741_s15  ;;  %p747_p3 = scmp.lt.s32.totalorder %s1007_s28, %s741_s15 }
  0xce   : > { %p748_p5 = por %p747_p3, %p746_p2 }
  0xd0   : > { %p749_p6 = pnand %p748_p5, %p742_p1 }
  0xd2   : > { %752 = shalt.err (!%p749_p6)  }
  0xd3   : > { %281 = dma.hbm_to_vmem [thread:$0]  %s275_s8, 64, %s279_s26, [#allocation3], %s865_s22, %s865_s22, %s866_s1 }
  0xd4   : > { %s292_s20 = sand.u32 7, %s1125_s14   ;;  %s479_s30 = sshll.u32 %s291_s6, 5 }
  0xd5   : > { %s294_s11 = sadd.s32 %s479_s30, %s292_s20 }
  0xd6   : > { %s480_s5 = sshll.u32 %s294_s11, 4 }
  0xd7   : > { %s296_s27 = scalar_lea.hbm %s1208_s2, %s480_s5 }
  0xd8   : > { %s753_s25 = scalar_lea.hbm %s296_s27, 64  ;;  %p756_p9 = scmp.lt.s32.totalorder %s296_s27, %s1208_s2 }
  0xd9   : > { %p754_p7 = scmp.ne.s32.totalorder %s296_s27, %s753_s25  ;;  %p757_p10 = scmp.lt.s32.totalorder %s998_s21, %s753_s25 }
  0xdb   : > { %p758_p11 = por %p757_p10, %p756_p9 }
  0xdd   : > { %p759_p12 = pnand %p758_p11, %p754_p7 }
  0xdf   : > { %762 = shalt.err (!%p759_p12)  }
  0xe0   : > { %s763_s26 = scalar_lea.vmem %s300_s19, 64  ;;  %p768_p0 = scmp.lt.s32.totalorder %s300_s19, %s982_s13 }
  0xe1   : > { %p764_p13 = scmp.ne.s32.totalorder %s300_s19, %s763_s26  ;;  %p769_p1 = scmp.lt.s32.totalorder %s1007_s28, %s763_s26 }
  0xe3   : > { %p770_p2 = por %p769_p1, %p768_p0 }
  0xe5   : > { %p771_p3 = pnand %p770_p2, %p764_p13 }
  0xe7   : > { %774 = shalt.err (!%p771_p3)  }
  0xe8   : > { %302 = dma.hbm_to_vmem [thread:$0]  %s296_s27, 64, %s300_s19, [#allocation3], %s865_s22, %s865_s22, %s866_s1 }
  0xe9   : > { %s135_s14 = scalar_lea.vmem [#allocation9], %s979_s10 }
  0xea   : > { %831 = dma.done.wait [#allocation3], 512 }
  0xeb   : > { %832 = vsyncadd [#allocation3], 4294966784  ;;  %v307_v0 = vld [vmem:[#allocation2] sm:$0xff]  ;;  %v308_v2 = vld [vmem:[#allocation2 + $0x8] sm:$0xff]  ;;  %s487_s21 = sshll.u32 %s851_s18, 9  ;;  %s340_s4 = sshll.u32 %s135_s14, 4  ;;  %s1160_s4 = int_to_ptr.vmem [resolvable:$true] %s340_s4 }
  0xec   : > { %v311_v1 = vld [vmem:[#allocation6] sm:$0xff]  ;;  %v312_v4 = vld [vmem:[#allocation6 + $0x8] sm:$0xff]  ;;  %v309_v5 = vld [vmem:[#allocation2 + $0x10] sm:$0xff]  ;;  %s1158_s28 = scalar_lea.hbm %s1209_s3, %s487_s21  ;;  %s1231_s18 = sand.u32 1, %s843_s16  }
  0xed   : > { %v315_v3 = vadd.f32 %v311_v1, %v307_v0  ;;  %v313_v6 = vld [vmem:[#allocation6 + $0x10] sm:$0xff]  ;;  %v316_v7 = vadd.f32 %v312_v4, %v308_v2  ;;  %v310_v9 = vld [vmem:[#allocation2 + $0x18] sm:$0xff]  ;;  %s324_s22 = scalar_lea.sflag [#allocation8], %s1231_s18  ;;  %s775_s1 = scalar_lea.vmem %s1160_s4, 512 }
  0xee   : > { %v317_v8 = vadd.f32 %v313_v6, %v309_v5  ;;  %v314_v10 = vld [vmem:[#allocation6 + $0x18] sm:$0xff]  ;;  %p776_p5 = scmp.ne.s32.totalorder %s1160_s4, %s775_s1  ;;  %s873_s19 = smov [#allocation9]  }
  0xef   : > { %319 = vst [vmem:[%s135_s14] sm:$0xff] %v315_v3  ;;  %v318_v11 = vadd.f32 %v314_v10, %v310_v9  ;;  %320 = vst [vmem:[%s135_s14 + $0x8] sm:$0xff] %v316_v7  ;;  %s779_s8 = sshll.u32 %s873_s19, 4  ;;  %s780_s8 = int_to_ptr.vmem [resolvable:$false] %s779_s8 }
  0xf0   : > { %321 = vst [vmem:[%s135_s14 + $0x10] sm:$0xff] %v317_v8  ;;  %p777_p6 = pnand %p776_p5, %p937_p4  ;;  %s781_s6 = scalar_lea.vmem %s780_s8, 1024 }
  0xf1   : > { %322 = vst [vmem:[%s135_s14 + $0x18] sm:$0xff] %v318_v11  ;;  %p782_p9 = scmp.lt.s32.totalorder %s1160_s4, %s780_s8  ;;  %p783_p10 = scmp.lt.s32.totalorder %s781_s6, %s775_s1 }
  0xf2   : > { %p778_p7 = pneg %p777_p6 }
  0xf3   : > { %p784_p11 = por %p783_p10, %p782_p9 }
  0xf5   : > { %p785_p12 = pnand %p784_p11, %p778_p7 }
  0xf7   : > { %788 = shalt.err (!%p785_p12)
}
  0xf8   : > { %s789_s9 = scalar_lea.hbm %s1158_s28, 512  ;;  %s793_s15 = scalar_lea.hbm %s1209_s3, 1024 }
  0xf9   : > { %p790_p13 = scmp.ne.s32.totalorder %s1158_s28, %s789_s9  ;;  %p794_p2 = scmp.lt.s32.totalorder %s1158_s28, %s1209_s3 }
  0xfa   : > { %p795_p3 = scmp.lt.s32.totalorder %s793_s15, %s789_s9 }
  0xfb   : > { %p791_p0 = pnand %p790_p13, %p937_p4 }
  0xfc   : > { %p796_p5 = por %p795_p3, %p794_p2 }
  0xfd   : > { %p792_p1 = pneg %p791_p0 }
  0xff   : > { %p797_p6 = pnand %p796_p5, %p792_p1 }
 0x101   : > { %800 = shalt.err (!%p797_p6)
}
 0x102   : > { %492 = dma.vmem_to_hbm [thread:$0]  (%p937_p4), %s1160_s4, 512, %s1158_s28, %s324_s22  }
 0x103 PF: > { %s1232_s11 = sld [smem:[#allocation25_spill]] }
 0x104   : > { %s1233_s5 = sld [smem:[#allocation22_spill]] }
 0x109   : > { %p504_p7 = scmp.ge.s32.totalorder %s1232_s11, 2 }
 0x10a   : > { %s352_s7 = sand.u32 1, %s1233_s5  }
 0x10b   : > { %p499_p9 = pnand %p504_p7, %p944_p8  ;;  %s353_s27 = scalar_lea.sflag [#allocation8], %s352_s7 }
 0x10d   : > { %p500_p10 = pneg %p499_p9 }
 0x10f   : > { %834 = dma.done.wait (%p500_p10), %s353_s27, 512  }
 0x110   : > { %836 = vsyncadd (%p500_p10), %s353_s27, 4294966784  ;;  %s21_s20 = sadd.s32 1, %s1232_s11   ;;  %s1235_s24 = sld [smem:[#allocation23_spill]] }
 0x111   : > { %p18_p11 = scmp.ge.s32.totalorder %s21_s20, 4   ;;  %s1236_s17 = sld [smem:[#allocation28_spill]] }
 0x112   : > { %s1237_s18 = sld [smem:[#allocation24_spill]]  ;;  %s1239_s15 = smov %s843_s16 }
 0x113   : > { %s1238_s19 = sld [smem:[#allocation26_spill]]  ;;  %20 = sbr.rel (!%p18_p11) target bundleno = 11 (0xb), region = 77 }
 0x116   : > { %s1240_s16 = smov %s1235_s24 }
 0x118   :  { %358 = vsyncpa [#allocation7], 1 }
 0x119   :  { %360 = vsyncpa [#allocation7 + $0x1], 1 }
 0x11a   :  { %361 = vsyncpa [#allocation8], 1 }
 0x11b   :  { %363 = vsyncpa [#allocation8 + $0x1], 1 }
 0x11c   :  { %364 = vsyncmov [#allocation3] }
 0x11f   :  { %s365_s25 = vpop.sfrf %364 }
 0x120   :  { %p486_p4 = scmp.ne.s32.totalorder %s365_s25, 0 }
 0x122   :  { %369 = shalt.err (%p486_p4)  }

</bundles_post_ra>
